<compile_context>
chip_gen: v5e
topology: v5e:2x2
jax: 0.10.0
libtpu: 0.0.40
codegen_flags: <defaults>
</compile_context>

<pallas_src>
import functools

import jax
import jax.numpy as jnp
from jax.experimental import pallas as pl
from jax.experimental.pallas import tpu as pltpu

LN_EPS = 1e-5                      # torch.nn.LayerNorm default


def _default_vmem_limit():
    # ~96 MiB on v5e/v6e (128 MiB physical), ~48 MiB on v7x (64 MiB physical).
    try:
        cap = int(pltpu.get_tpu_info().vmem_capacity_bytes)
    except Exception:
        cap = 64 * 1024 * 1024
    return min((cap * 3) // 4, 112 * 1024 * 1024)


VMEM_LIMIT = _default_vmem_limit()


# ----------------------------- in-kernel helpers -----------------------------
def _layernorm(x, g, b):
    mu = jnp.mean(x, axis=-1, keepdims=True)
    var = jnp.mean((x - mu) ** 2, axis=-1, keepdims=True)
    return (x - mu) * jax.lax.rsqrt(var + LN_EPS) * g + b


def _erf(x):
    # Abramowitz & Stegun 7.1.26 polynomial, |err| <= 1.5e-7 (~= f32 eps).
    # Divide replaced by EUP approx reciprocal (frees VALU slots).
    a1, a2, a3, a4, a5 = (0.254829592, -0.284496736, 1.421413741,
                          -1.453152027, 1.061405429)
    p = 0.3275911
    s = jnp.sign(x)
    z = jnp.abs(x)
    t = pl.reciprocal(1.0 + p * z, approx=True)
    poly = ((((a5 * t + a4) * t + a3) * t + a2) * t + a1) * t
    return s * (1.0 - poly * jnp.exp(-z * z))


def _gelu_exact(x):
    return 0.5 * x * (1.0 + _erf(x * 0.7071067811865476))


# ------------------------------ Pallas kernels --------------------------------
def _attn_kernel(x_ref, wqkv_ref, bqkv_ref, wo_ref, bo_ref, g1_ref, be1_ref,
                 o_ref, qkv_sc, *, n_heads, q_tile):
    """Causal MHA + residual + LayerNorm for one (batch, query-tile) block.

    Grid: (B, T // q_tile), query axis innermost ('arbitrary').  The fused
    QKV projection for the full sequence of this batch element is computed at
    q-tile 0 and cached in VMEM scratch for the remaining query tiles.
    """
    i = pl.program_id(1)
    _, T, D = x_ref.shape
    hd = D // n_heads

    @pl.when(i == 0)
    def _():
        qkv = jnp.dot(x_ref[0].astype(jnp.bfloat16), wqkv_ref[...],
                      preferred_element_type=jnp.float32) + bqkv_ref[...]
        qkv_sc[...] = qkv.astype(jnp.bfloat16)

    row0 = pl.multiple_of(i * q_tile, q_tile)

    # Bulk head-major views (single reshape each; no per-head slice/concat).
    q = qkv_sc[pl.ds(row0, q_tile), 0:D].reshape(q_tile, n_heads, hd)
    k = qkv_sc[:, D:2 * D].reshape(T, n_heads, hd)
    v = qkv_sc[:, 2 * D:3 * D].reshape(T, n_heads, hd)

    scale = 1.0 / jnp.sqrt(jnp.float32(hd))
    s = jnp.einsum("qhd,khd->hqk", q, k,
                   preferred_element_type=jnp.float32) * scale     # (H,tq,T)

    qpos = row0 + jax.lax.broadcasted_iota(jnp.int32, (q_tile, T), 0)
    kpos = jax.lax.broadcasted_iota(jnp.int32, (q_tile, T), 1)
    s = jnp.where((kpos <= qpos)[None], s, -1e30)
    s = s - jnp.max(s, axis=-1, keepdims=True)
    p = jnp.exp(s)
    p = p * pl.reciprocal(jnp.sum(p, axis=-1, keepdims=True), approx=True)

    o = jnp.einsum("hqk,khd->qhd", p.astype(jnp.bfloat16), v,
                   preferred_element_type=jnp.float32)             # (tq,H,hd)

    # Single full-K output projection (heads folded back on the lane axis).
    attn = jnp.dot(o.reshape(q_tile, D).astype(jnp.bfloat16), wo_ref[...],
                   preferred_element_type=jnp.float32) + bo_ref[...]

    # dropout == identity (eval mode); residual + LayerNorm in f32.
    x_q = x_ref[0, pl.ds(row0, q_tile), :].astype(jnp.float32)
    o_ref[0] = _layernorm(x_q + attn, g1_ref[...], be1_ref[...]).astype(o_ref.dtype)


def _ffn_kernel(x_ref, w1_ref, b1_ref, w2_ref, b2_ref, g2_ref, be2_ref, o_ref):
    """Linear -> GELU(exact erf) -> Linear -> residual -> LayerNorm (row tile)."""
    x = x_ref[...].astype(jnp.float32)                             # (TM, D)
    h = jnp.dot(x_ref[...].astype(jnp.bfloat16), w1_ref[...],
                preferred_element_type=jnp.float32) + b1_ref[...]
    h = _gelu_exact(h)
    h = jnp.dot(h.astype(jnp.bfloat16), w2_ref[...],
                preferred_element_type=jnp.float32) + b2_ref[...]
    o_ref[...] = _layernorm(x + h, g2_ref[...], be2_ref[...]).astype(o_ref.dtype)


def _head_kernel(x_ref, gf_ref, bf_ref, w_ref, bo_ref, o_ref, xn_sc):
    """Final LayerNorm (once per row tile) + output head per vocab tile."""
    @pl.when(pl.program_id(1) == 0)
    def _():
        xn = _layernorm(x_ref[...].astype(jnp.float32), gf_ref[...], bf_ref[...])
        xn_sc[...] = xn.astype(jnp.bfloat16)
    o_ref[...] = (jnp.dot(xn_sc[...], w_ref[...],
                          preferred_element_type=jnp.float32)
                  + bo_ref[...]).astype(o_ref.dtype)


# ------------------------------- tiling helpers --------------------------------
def _pick_row_tile(n_rows, max_tile=512):
    for t in (512, 256, 128, 64, 32, 16, 8):
        if t <= max_tile and n_rows % t == 0:
            return t
    return n_rows          # full extent (always a legal block shape)


def _pick_q_tile(seq_len, max_tile=256):
    for t in (256, 128, 64, 32, 16, 8):
        if t <= max_tile and seq_len % t == 0:
            return t
    return seq_len


def _pick_vocab_tile(v, max_tile=512):
    for t in (512, 256, 128):
        if t <= max_tile and v % t == 0:
            return t
    return v


# ------------------------------- wrappers --------------------------------------
def attention_block(x, wqkv_t, bqkv, wo_t, bo, g1, be1, *, n_heads, q_tile=None):
    B, T, D = x.shape
    tq = _pick_q_tile(T) if q_tile is None else q_tile
    assert T % tq == 0
    const = lambda b, i: (0, 0)
    return pl.pallas_call(
        functools.partial(_attn_kernel, n_heads=n_heads, q_tile=tq),
        out_shape=jax.ShapeDtypeStruct((B, T, D), jnp.bfloat16),
        grid=(B, T // tq),
        in_specs=[
            pl.BlockSpec((1, T, D), lambda b, i: (b, 0, 0)),
            pl.BlockSpec(wqkv_t.shape, const),   # weights: constant index maps
            pl.BlockSpec(bqkv.shape, const),     # -> stay VMEM resident
            pl.BlockSpec(wo_t.shape, const),
            pl.BlockSpec(bo.shape, const),
            pl.BlockSpec(g1.shape, const),
            pl.BlockSpec(be1.shape, const),
        ],
        out_specs=pl.BlockSpec((1, tq, D), lambda b, i: (b, i, 0)),
        scratch_shapes=[pltpu.VMEM((T, 3 * D), jnp.bfloat16)],
        compiler_params=pltpu.CompilerParams(
            dimension_semantics=("parallel", "arbitrary"),
            vmem_limit_bytes=VMEM_LIMIT),
    )(x, wqkv_t, bqkv, wo_t, bo, g1, be1)


def ffn_block(x2, w1_t, b1, w2_t, b2, g2, be2, *, row_tile=None):
    N, D = x2.shape
    tm = _pick_row_tile(N) if row_tile is None else row_tile
    assert N % tm == 0
    const = lambda i: (0, 0)
    return pl.pallas_call(
        _ffn_kernel,
        out_shape=jax.ShapeDtypeStruct((N, D), jnp.bfloat16),
        grid=(N // tm,),
        in_specs=[
            pl.BlockSpec((tm, D), lambda i: (i, 0)),
            pl.BlockSpec(w1_t.shape, const),
            pl.BlockSpec(b1.shape, const),
            pl.BlockSpec(w2_t.shape, const),
            pl.BlockSpec(b2.shape, const),
            pl.BlockSpec(g2.shape, const),
            pl.BlockSpec(be2.shape, const),
        ],
        out_specs=pl.BlockSpec((tm, D), lambda i: (i, 0)),
        compiler_params=pltpu.CompilerParams(
            dimension_semantics=("parallel",),
            vmem_limit_bytes=VMEM_LIMIT),
    )(x2, w1_t, b1, w2_t, b2, g2, be2)


def lm_head(x2, gf, bf, w_out_t, b_out, *, row_tile=None, vocab_tile=None):
    """x2: (N, D) activations; w_out_t: (D, V_pad) bf16 with V_pad % 128 == 0."""
    N, D = x2.shape
    Vp = w_out_t.shape[1]
    tm = _pick_row_tile(N) if row_tile is None else row_tile
    tv = _pick_vocab_tile(Vp) if vocab_tile is None else vocab_tile
    assert N % tm == 0 and Vp % tv == 0
    return pl.pallas_call(
        _head_kernel,
        out_shape=jax.ShapeDtypeStruct((N, Vp), jnp.float32),
        grid=(N // tm, Vp // tv),
        in_specs=[
            pl.BlockSpec((tm, D), lambda i, j: (i, 0)),
            pl.BlockSpec(gf.shape, lambda i, j: (0, 0)),
            pl.BlockSpec(bf.shape, lambda i, j: (0, 0)),
            pl.BlockSpec((D, tv), lambda i, j: (0, j)),
            pl.BlockSpec((1, tv), lambda i, j: (0, j)),
        ],
        out_specs=pl.BlockSpec((tm, tv), lambda i, j: (i, j)),
        scratch_shapes=[pltpu.VMEM((tm, D), jnp.bfloat16)],
        compiler_params=pltpu.CompilerParams(
            dimension_semantics=("parallel", "arbitrary"),
            vmem_limit_bytes=VMEM_LIMIT),
    )(x2, gf, bf, w_out_t, b_out)


def gpt_mini_forward(kparams, input_ids, n_heads, *, row_tile=None,
                     vocab_tile=None, q_tile=None):
    B, T = input_ids.shape
    # embedding gathers are glue (plain JAX); carry activations in bf16
    x = kparams["token_embed"][input_ids] + kparams["pos_embed"][:T][None]
    x = x.astype(jnp.bfloat16)
    D = x.shape[-1]
    for p in kparams["blocks"]:
        x = attention_block(x, p["wqkv_t"], p["bqkv"], p["wo_t"], p["bo"],
                            p["g1"], p["be1"], n_heads=n_heads, q_tile=q_tile)
        x2 = ffn_block(x.reshape(B * T, D), p["w1_t"], p["b1"], p["w2_t"],
                       p["b2"], p["g2"], p["be2"], row_tile=row_tile)
        x = x2.reshape(B, T, D)
    logits = lm_head(x.reshape(B * T, D), kparams["gf"], kparams["bf"],
                     kparams["w_out_t"], kparams["b_out"],
                     row_tile=row_tile, vocab_tile=vocab_tile)
    V = kparams["vocab_size"]
    return logits[:, :V].reshape(B, T, V)


# ------------------------------ params / reference -----------------------------
def init_params(key, *, vocab_size, d_model, n_heads, num_layers, max_len):
    """PyTorch-layout (out, in) f32 parameters."""
    std = 0.02
    keys = jax.random.split(key, num_layers + 3)
    params = {
        "token_embed": std * jax.random.normal(keys[0], (vocab_size, d_model), jnp.float32),
        "pos_embed":   std * jax.random.normal(keys[1], (max_len, d_model), jnp.float32),
        "blocks": [],
    }
    d = d_model
    for l in range(num_layers):
        k = jax.random.split(keys[2 + l], 8)
        params["blocks"].append({
            "wqkv": std * jax.random.normal(k[0], (3 * d, d), jnp.float32),
            "bqkv": std * jax.random.normal(k[1], (1, 3 * d), jnp.float32),
            "wo":   std * jax.random.normal(k[2], (d, d), jnp.float32),
            "bo":   std * jax.random.normal(k[3], (1, d), jnp.float32),
            "g1":   jnp.ones((1, d), jnp.float32),
            "be1":  jnp.zeros((1, d), jnp.float32),
            "w1":   std * jax.random.normal(k[4], (4 * d, d), jnp.float32),
            "b1":   std * jax.random.normal(k[5], (1, 4 * d), jnp.float32),
            "w2":   std * jax.random.normal(k[6], (d, 4 * d), jnp.float32),
            "b2":   std * jax.random.normal(k[7], (1, d), jnp.float32),
            "g2":   jnp.ones((1, d), jnp.float32),
            "be2":  jnp.zeros((1, d), jnp.float32),
        })
    kh = jax.random.split(keys[-1], 2)
    params["gf"] = jnp.ones((1, d), jnp.float32)
    params["bf"] = jnp.zeros((1, d), jnp.float32)
    params["w_out"] = std * jax.random.normal(kh[0], (vocab_size, d), jnp.float32)
    params["b_out"] = std * jax.random.normal(kh[1], (1, vocab_size), jnp.float32)
    return params


def prepare_kernel_params(params):
    """One-time weight prep: transpose linears (contraction on the sublane axis),
    cast matmul weights to bf16, and pad the vocab axis to a multiple of 128 so
    LM-head tiles are streamed and logits store lane-dense."""
    bf16 = jnp.bfloat16
    V, d = params["w_out"].shape
    Vp = max(128, ((V + 127) // 128) * 128)
    w_out_t = params["w_out"].T.astype(bf16)          # (D, V)
    b_out = params["b_out"]
    if Vp != V:
        w_out_t = jnp.pad(w_out_t, ((0, 0), (0, Vp - V)))
        b_out = jnp.pad(b_out, ((0, 0), (0, Vp - V)))
    kp = {
        "token_embed": params["token_embed"],
        "pos_embed": params["pos_embed"],
        "gf": params["gf"], "bf": params["bf"],
        "w_out_t": w_out_t,                           # (D, V_pad) bf16
        "b_out": b_out,                               # (1, V_pad) f32
        "vocab_size": V,
        "blocks": [],
    }
    for p in params["blocks"]:
        kp["blocks"].append({
            "wqkv_t": p["wqkv"].T.astype(bf16),       # (D, 3D)
            "bqkv": p["bqkv"],
            "wo_t": p["wo"].T.astype(bf16),           # (D, D)
            "bo": p["bo"],
            "g1": p["g1"], "be1": p["be1"],
            "w1_t": p["w1"].T.astype(bf16),           # (D, 4D)
            "b1": p["b1"],
            "w2_t": p["w2"].T.astype(bf16),           # (4D, D)
            "b2": p["b2"],
            "g2": p["g2"], "be2": p["be2"],
        })
    return kp


def ref_forward(params, input_ids, n_heads):
    """Pure-JAX f32 reference (mirrors the PyTorch forward) for a sanity check."""
    x = params["token_embed"][input_ids] + params["pos_embed"][:input_ids.shape[1]][None]
    B, T, D = x.shape
    hd = D // n_heads
    mask = jnp.tril(jnp.ones((T, T), bool))
    for p in params["blocks"]:
        qkv = jnp.einsum("btd,ed->bte", x, p["wqkv"], precision="highest") + p["bqkv"][0]
        q, k, v = qkv[..., :D], qkv[..., D:2 * D], qkv[..., 2 * D:]
        q = q.reshape(B, T, n_heads, hd).transpose(0, 2, 1, 3)
        k = k.reshape(B, T, n_heads, hd).transpose(0, 2, 1, 3)
        v = v.reshape(B, T, n_heads, hd).transpose(0, 2, 1, 3)
        s = jnp.einsum("bhtd,bhsd->bhts", q, k, precision="highest") / jnp.sqrt(
            jnp.float32(hd))
        s = jnp.where(mask, s, -jnp.inf)
        a = jax.nn.softmax(s, axis=-1)
        o = jnp.einsum("bhts,bhsd->bhtd", a, v, precision="highest")
        o = o.transpose(0, 2, 1, 3).reshape(B, T, D)
        o = jnp.einsum("btd,ed->bte", o, p["wo"], precision="highest") + p["bo"][0]
        x = _layernorm(x + o, p["g1"], p["be1"])
        h = jnp.einsum("btd,ed->bte", x, p["w1"], precision="highest") + p["b1"][0]
        h = jax.nn.gelu(h, approximate=False)
        h = jnp.einsum("bte,de->btd", h, p["w2"], precision="highest") + p["b2"][0]
        x = _layernorm(x + h, p["g2"], p["be2"])
    x = _layernorm(x, params["gf"], params["bf"])
    return jnp.einsum("btd,vd->btv", x, params["w_out"],
                      precision="highest") + params["b_out"][0]


# ----------------------------------- main ---------------------------------------
if __name__ == "__main__":
    VOCAB, D_MODEL, N_HEADS, N_LAYERS, MAX_LEN = 64, 32, 4, 2, 16
    B, T = 2, 16   # B*T = 32 rows; row_tile=8 / q_tile=8 exercise multi-step grids

    key = jax.random.PRNGKey(0)
    kp, kx = jax.random.split(key)
    params = init_params(kp, vocab_size=VOCAB, d_model=D_MODEL, n_heads=N_HEADS,
                         num_layers=N_LAYERS, max_len=MAX_LEN)
    input_ids = jax.random.randint(kx, (B, T), 0, VOCAB, dtype=jnp.int32)

    kparams = prepare_kernel_params(params)
    logits = gpt_mini_forward(kparams, input_ids, N_HEADS, row_tile=8, q_tile=8)
    logits = jax.block_until_ready(logits)
    assert logits.shape == (B, T, VOCAB) and logits.dtype == jnp.float32

    # sanity check vs. pure-JAX f32 reference (bf16 matmuls/activations, f32 math)
    ref = jax.block_until_ready(ref_forward(params, input_ids, N_HEADS))
    assert jnp.allclose(logits, ref, atol=3e-2, rtol=3e-2), (
        float(jnp.max(jnp.abs(logits - ref))))

    print("KERNEL_OK")
</pallas_src>

<mosaic_0001>
module attributes {stable_mosaic.version = 11 : i64} {
  func.func @_attn_kernel(%arg0: i32, %arg1: i32, %arg2: memref<1x16x32xbf16, #tpu.memory_space<vmem>>, %arg3: memref<32x96xbf16, #tpu.memory_space<vmem>>, %arg4: memref<1x96xf32, #tpu.memory_space<vmem>>, %arg5: memref<32x32xbf16, #tpu.memory_space<vmem>>, %arg6: memref<1x32xf32, #tpu.memory_space<vmem>>, %arg7: memref<1x32xf32, #tpu.memory_space<vmem>>, %arg8: memref<1x32xf32, #tpu.memory_space<vmem>>, %arg9: memref<1x8x32xbf16, #tpu.memory_space<vmem>>, %arg10: memref<16x96xbf16, #tpu.memory_space<vmem>>) attributes {dimension_semantics = [#tpu.dimension_semantics<parallel>, #tpu.dimension_semantics<arbitrary>], iteration_bounds = array<i64: 2, 2>, scalar_prefetch = 0 : i64, scratch_operands = 1 : i64, tpu.core_type = #tpu.core_type<tc>, window_params = [{transform_indices = @transform_0, window_bounds = array<i64: 1, 16, 32>}, {pipeline_mode = #tpu.pipeline_mode<synchronous>, transform_indices = @transform_1, window_bounds = array<i64: 32, 96>}, {pipeline_mode = #tpu.pipeline_mode<synchronous>, transform_indices = @transform_2, window_bounds = array<i64: 1, 96>}, {pipeline_mode = #tpu.pipeline_mode<synchronous>, transform_indices = @transform_3, window_bounds = array<i64: 32, 32>}, {pipeline_mode = #tpu.pipeline_mode<synchronous>, transform_indices = @transform_4, window_bounds = array<i64: 1, 32>}, {pipeline_mode = #tpu.pipeline_mode<synchronous>, transform_indices = @transform_5, window_bounds = array<i64: 1, 32>}, {pipeline_mode = #tpu.pipeline_mode<synchronous>, transform_indices = @transform_6, window_bounds = array<i64: 1, 32>}, {transform_indices = @transform_7, window_bounds = array<i64: 1, 8, 32>}]} {
    %c0_i32 = arith.constant 0 : i32
    %0 = arith.cmpi eq, %arg1, %c0_i32 : i32
    %1 = arith.extui %0 : i1 to i32
    %c0_i32_0 = arith.constant 0 : i32
    %2 = arith.cmpi ne, %1, %c0_i32_0 : i32
    scf.if %2 {
      %c0_28 = arith.constant 0 : index
      %c0_29 = arith.constant 0 : index
      %c0_30 = arith.constant 0 : index
      %80 = vector.load %arg2[%c0_28, %c0_29, %c0_30] : memref<1x16x32xbf16, #tpu.memory_space<vmem>>, vector<1x16x32xbf16>
      %81 = vector.shape_cast %80 : vector<1x16x32xbf16> to vector<16x32xbf16>
      %c0_31 = arith.constant 0 : index
      %c0_32 = arith.constant 0 : index
      %82 = vector.load %arg3[%c0_31, %c0_32] : memref<32x96xbf16, #tpu.memory_space<vmem>>, vector<32x96xbf16>
      %cst_33 = arith.constant dense<0.000000e+00> : vector<16x96xf32>
      %83 = tpu.matmul %81, %82, %cst_33 {dimension_numbers = #tpu.dot_dimension_numbers<[1], [0], [0], [1], [0, 0, 1, 1], [], []>} : vector<16x32xbf16>, vector<32x96xbf16>, vector<16x96xf32> -> vector<16x96xf32>
      %c0_34 = arith.constant 0 : index
      %c0_35 = arith.constant 0 : index
      %84 = vector.load %arg4[%c0_34, %c0_35] : memref<1x96xf32, #tpu.memory_space<vmem>>, vector<1x96xf32>
      %85 = vector.broadcast %84 : vector<1x96xf32> to vector<16x96xf32>
      %86 = arith.addf %83, %85 : vector<16x96xf32>
      %87 = arith.truncf %86 : vector<16x96xf32> to vector<16x96xbf16>
      %c0_36 = arith.constant 0 : index
      %c0_37 = arith.constant 0 : index
      %88 = vector.load %arg10[%c0_36, %c0_37] : memref<16x96xbf16, #tpu.memory_space<vmem>>, vector<16x96xbf16>
      tpu.vector_store %arg10[%c0_36, %c0_37], %87 {strides = array<i32>} : memref<16x96xbf16, #tpu.memory_space<vmem>>, vector<16x96xbf16>,
    } else {
    }
    %c8_i32 = arith.constant 8 : i32
    %3 = arith.muli %arg1, %c8_i32 : i32
    %4 = tpu.assume_multiple %3, 8 : i32
    %5 = arith.index_cast %4 : i32 to index
    %c0 = arith.constant 0 : index
    %6 = vector.load %arg10[%5, %c0] : memref<16x96xbf16, #tpu.memory_space<vmem>>, vector<8x32xbf16>
    %7 = vector.shape_cast %6 : vector<8x32xbf16> to vector<8x4x8xbf16>
    %c0_1 = arith.constant 0 : index
    %c32 = arith.constant 32 : index
    %8 = vector.load %arg10[%c0_1, %c32] : memref<16x96xbf16, #tpu.memory_space<vmem>>, vector<16x32xbf16>
    %9 = vector.shape_cast %8 : vector<16x32xbf16> to vector<16x4x8xbf16>
    %c0_2 = arith.constant 0 : index
    %c64 = arith.constant 64 : index
    %10 = vector.load %arg10[%c0_2, %c64] : memref<16x96xbf16, #tpu.memory_space<vmem>>, vector<16x32xbf16>
    %11 = vector.shape_cast %10 : vector<16x32xbf16> to vector<16x4x8xbf16>
    %cst = arith.constant 8.000000e+00 : f32
    %12 = math.sqrt %cst : f32
    %cst_3 = arith.constant 1.000000e+00 : f32
    %13 = arith.divf %cst_3, %12 : f32
    "tpu.trace_start"() <{level = 10 : i32, message = "qhd,khd->hqk"}> : () -> ()
    %cst_4 = arith.constant dense<0.000000e+00> : vector<4x8x16xf32>
    %14 = tpu.matmul %7, %9, %cst_4 {dimension_numbers = #tpu.dot_dimension_numbers<[2], [2], [0], [0], [0, 1, 0, 0, 1, 0], [1], [1]>} : vector<8x4x8xbf16>, vector<16x4x8xbf16>, vector<4x8x16xf32> -> vector<4x8x16xf32>
    "tpu.trace_stop"() : () -> ()
    %15 = vector.broadcast %13 : f32 to vector<4x8x16xf32>
    %16 = arith.mulf %14, %15 : vector<4x8x16xf32>
    %17 = tpu.iota {dimensions = array<i32: 0>} : vector<8x16xi32>
    %18 = vector.broadcast %4 : i32 to vector<8x16xi32>
    %19 = arith.addi %18, %17 : vector<8x16xi32>
    %20 = tpu.iota {dimensions = array<i32: 1>} : vector<8x16xi32>
    %21 = arith.cmpi sle, %20, %19 : vector<8x16xi32>
    %22 = vector.shape_cast %21 : vector<8x16xi1> to vector<1x8x16xi1>
    %cst_5 = arith.constant -1.000000e+30 : f32
    %23 = vector.shape_cast %22 : vector<1x8x16xi1> to vector<1x8x16xi1>
    %24 = vector.broadcast %23 : vector<1x8x16xi1> to vector<4x8x16xi1>
    %25 = vector.broadcast %cst_5 : f32 to vector<4x8x16xf32>
    %26 = arith.select %24, %16, %25 : vector<4x8x16xi1>, vector<4x8x16xf32>
    %cst_6 = arith.constant dense<0xFF800000> : vector<4x8xf32>
    %27 = vector.multi_reduction <maximumf>, %26, %cst_6 [2] : vector<4x8x16xf32> to vector<4x8xf32>
    %28 = vector.shape_cast %27 : vector<4x8xf32> to vector<4x8x1xf32>
    %29 = vector.broadcast %28 : vector<4x8x1xf32> to vector<4x8x16xf32>
    %30 = arith.subf %26, %29 : vector<4x8x16xf32>
    %31 = math.exp %30 : vector<4x8x16xf32>
    %cst_7 = arith.constant dense<0.000000e+00> : vector<4x8xf32>
    %32 = vector.multi_reduction <add>, %31, %cst_7 [2] : vector<4x8x16xf32> to vector<4x8xf32>
    %33 = vector.shape_cast %32 : vector<4x8xf32> to vector<4x8x1xf32>
    %34 = tpu.reciprocal %33 {approx = true} : vector<4x8x1xf32> -> vector<4x8x1xf32>
    %35 = vector.broadcast %34 : vector<4x8x1xf32> to vector<4x8x16xf32>
    %36 = arith.mulf %31, %35 : vector<4x8x16xf32>
    %37 = arith.truncf %36 : vector<4x8x16xf32> to vector<4x8x16xbf16>
    "tpu.trace_start"() <{level = 10 : i32, message = "hqk,khd->qhd"}> : () -> ()
    %cst_8 = arith.constant dense<0.000000e+00> : vector<4x8x8xf32>
    %38 = tpu.matmul %11, %37, %cst_8 {dimension_numbers = #tpu.dot_dimension_numbers<[0], [2], [2], [1], [0, 1, 0, 2, 1, 1], [1], [0]>} : vector<16x4x8xbf16>, vector<4x8x16xbf16>, vector<4x8x8xf32> -> vector<4x8x8xf32>
    %39 = tpu.transpose %38, [2, 0, 1] : vector<4x8x8xf32> -> vector<8x4x8xf32>
    "tpu.trace_stop"() : () -> ()
    %40 = vector.shape_cast %39 : vector<8x4x8xf32> to vector<8x32xf32>
    %41 = arith.truncf %40 : vector<8x32xf32> to vector<8x32xbf16>
    %c0_9 = arith.constant 0 : index
    %c0_10 = arith.constant 0 : index
    %42 = vector.load %arg5[%c0_9, %c0_10] : memref<32x32xbf16, #tpu.memory_space<vmem>>, vector<32x32xbf16>
    %cst_11 = arith.constant dense<0.000000e+00> : vector<8x32xf32>
    %43 = tpu.matmul %41, %42, %cst_11 {dimension_numbers = #tpu.dot_dimension_numbers<[1], [0], [0], [1], [0, 0, 1, 1], [], []>} : vector<8x32xbf16>, vector<32x32xbf16>, vector<8x32xf32> -> vector<8x32xf32>
    %c0_12 = arith.constant 0 : index
    %c0_13 = arith.constant 0 : index
    %44 = vector.load %arg6[%c0_12, %c0_13] : memref<1x32xf32, #tpu.memory_space<vmem>>, vector<1x32xf32>
    %45 = vector.broadcast %44 : vector<1x32xf32> to vector<8x32xf32>
    %46 = arith.addf %43, %45 : vector<8x32xf32>
    %c0_14 = arith.constant 0 : index
    %47 = arith.index_cast %4 : i32 to index
    %c0_15 = arith.constant 0 : index
    %48 = vector.load %arg2[%c0_14, %47, %c0_15] : memref<1x16x32xbf16, #tpu.memory_space<vmem>>, vector<1x8x32xbf16>
    %49 = vector.shape_cast %48 : vector<1x8x32xbf16> to vector<8x32xbf16>
    %50 = arith.extf %49 : vector<8x32xbf16> to vector<8x32xf32>
    %51 = arith.addf %50, %46 : vector<8x32xf32>
    %c0_16 = arith.constant 0 : index
    %c0_17 = arith.constant 0 : index
    %52 = vector.load %arg7[%c0_16, %c0_17] : memref<1x32xf32, #tpu.memory_space<vmem>>, vector<1x32xf32>
    %c0_18 = arith.constant 0 : index
    %c0_19 = arith.constant 0 : index
    %53 = vector.load %arg8[%c0_18, %c0_19] : memref<1x32xf32, #tpu.memory_space<vmem>>, vector<1x32xf32>
    %cst_20 = arith.constant dense<0.000000e+00> : vector<8xf32>
    %54 = vector.multi_reduction <add>, %51, %cst_20 [1] : vector<8x32xf32> to vector<8xf32>
    %55 = vector.shape_cast %54 : vector<8xf32> to vector<8x1xf32>
    %cst_21 = arith.constant 3.200000e+01 : f32
    %56 = vector.broadcast %cst_21 : f32 to vector<8x1xf32>
    %57 = arith.divf %55, %56 : vector<8x1xf32>
    %58 = vector.broadcast %57 : vector<8x1xf32> to vector<8x32xf32>
    %59 = arith.subf %51, %58 : vector<8x32xf32>
    %60 = arith.mulf %59, %59 : vector<8x32xf32>
    %cst_22 = arith.constant dense<0.000000e+00> : vector<8xf32>
    %61 = vector.multi_reduction <add>, %60, %cst_22 [1] : vector<8x32xf32> to vector<8xf32>
    %62 = vector.shape_cast %61 : vector<8xf32> to vector<8x1xf32>
    %cst_23 = arith.constant 3.200000e+01 : f32
    %63 = vector.broadcast %cst_23 : f32 to vector<8x1xf32>
    %64 = arith.divf %62, %63 : vector<8x1xf32>
    %65 = vector.broadcast %57 : vector<8x1xf32> to vector<8x32xf32>
    %66 = arith.subf %51, %65 : vector<8x32xf32>
    %cst_24 = arith.constant 9.99999974E-6 : f32
    %67 = vector.broadcast %cst_24 : f32 to vector<8x1xf32>
    %68 = arith.addf %64, %67 : vector<8x1xf32>
    %69 = math.rsqrt %68 : vector<8x1xf32>
    %70 = vector.broadcast %69 : vector<8x1xf32> to vector<8x32xf32>
    %71 = arith.mulf %66, %70 : vector<8x32xf32>
    %72 = vector.broadcast %52 : vector<1x32xf32> to vector<8x32xf32>
    %73 = arith.mulf %71, %72 : vector<8x32xf32>
    %74 = vector.broadcast %53 : vector<1x32xf32> to vector<8x32xf32>
    %75 = arith.addf %73, %74 : vector<8x32xf32>
    %76 = arith.truncf %75 : vector<8x32xf32> to vector<8x32xbf16>
    %c0_25 = arith.constant 0 : index
    %c0_26 = arith.constant 0 : index
    %c0_27 = arith.constant 0 : index
    %77 = vector.load %arg9[%c0_25, %c0_26, %c0_27] : memref<1x8x32xbf16, #tpu.memory_space<vmem>>, vector<1x8x32xbf16>
    %78 = vector.shape_cast %77 : vector<1x8x32xbf16> to vector<8x32xbf16>
    %79 = vector.shape_cast %76 : vector<8x32xbf16> to vector<1x8x32xbf16>
    tpu.vector_store %arg9[%c0_25, %c0_26, %c0_27], %79 {strides = array<i32>} : memref<1x8x32xbf16, #tpu.memory_space<vmem>>, vector<1x8x32xbf16>,
    return
  }
  func.func @transform_0(%arg0: i32, %arg1: i32) -> (i32, i32, i32) {
    %c0_i32 = arith.constant 0 : i32
    %c0_i32_0 = arith.constant 0 : i32
    %c0_i32_1 = arith.constant 0 : i32
    return %arg0, %c0_i32, %c0_i32_0 : i32, i32, i32
  }
  func.func @transform_1(%arg0: i32, %arg1: i32) -> (i32, i32) {
    %c0_i32 = arith.constant 0 : i32
    %c0_i32_0 = arith.constant 0 : i32
    %c0_i32_1 = arith.constant 0 : i32
    return %c0_i32, %c0_i32_0 : i32, i32
  }
  func.func @transform_2(%arg0: i32, %arg1: i32) -> (i32, i32) {
    %c0_i32 = arith.constant 0 : i32
    %c0_i32_0 = arith.constant 0 : i32
    %c0_i32_1 = arith.constant 0 : i32
    return %c0_i32, %c0_i32_0 : i32, i32
  }
  func.func @transform_3(%arg0: i32, %arg1: i32) -> (i32, i32) {
    %c0_i32 = arith.constant 0 : i32
    %c0_i32_0 = arith.constant 0 : i32
    %c0_i32_1 = arith.constant 0 : i32
    return %c0_i32, %c0_i32_0 : i32, i32
  }
  func.func @transform_4(%arg0: i32, %arg1: i32) -> (i32, i32) {
    %c0_i32 = arith.constant 0 : i32
    %c0_i32_0 = arith.constant 0 : i32
    %c0_i32_1 = arith.constant 0 : i32
    return %c0_i32, %c0_i32_0 : i32, i32
  }
  func.func @transform_5(%arg0: i32, %arg1: i32) -> (i32, i32) {
    %c0_i32 = arith.constant 0 : i32
    %c0_i32_0 = arith.constant 0 : i32
    %c0_i32_1 = arith.constant 0 : i32
    return %c0_i32, %c0_i32_0 : i32, i32
  }
  func.func @transform_6(%arg0: i32, %arg1: i32) -> (i32, i32) {
    %c0_i32 = arith.constant 0 : i32
    %c0_i32_0 = arith.constant 0 : i32
    %c0_i32_1 = arith.constant 0 : i32
    return %c0_i32, %c0_i32_0 : i32, i32
  }
  func.func @transform_7(%arg0: i32, %arg1: i32) -> (i32, i32, i32) {
    %c0_i32 = arith.constant 0 : i32
    %c0_i32_0 = arith.constant 0 : i32
    return %arg0, %arg1, %c0_i32 : i32, i32, i32
  }
}

</mosaic_0001>

<bundles_post_ra>
// kernel: tpu_custom_call.1
= control target key start
LH: loop header
LB: loop body
LE: loop exit
PB: predicated region body
PF: predicated region fallthrough
CT: control target
= control target key end

     0   :  { %s2128_s0 = inlined_call_operand.hbm [shape: bf16[2,16,32], index: 0, kind: input, shape index: {}]   ;;  %s2129_s1 = inlined_call_operand.hbm [shape: bf16[32,96], index: 1, kind: input, shape index: {}]   ;;  %s2130_s2 = inlined_call_operand.vmem [shape: f32[1,96], index: 2, kind: input, shape index: {}]   ;;  %s2131_s3 = inlined_call_operand.hbm [shape: bf16[32,32], index: 3, kind: input, shape index: {}]   ;;  %s2132_s4 = inlined_call_operand.vmem [shape: f32[1,32], index: 4, kind: input, shape index: {}]   ;;  %s2133_s5 = inlined_call_operand.vmem [shape: f32[1,32], index: 5, kind: input, shape index: {}]   ;;  %s2134_s6 = inlined_call_operand.vmem [shape: f32[1,32], index: 6, kind: input, shape index: {}]   ;;  %s2135_s7 = inlined_call_operand.hbm [shape: bf16[2,16,32], index: 7, kind: output, shape index: {}]  }
   0x1   :  { %2146 = sst [smem:[#allocation20_spill]] %s2129_s1 }
   0x2   :  { %2147 = sst [smem:[#allocation21_spill]] %s2131_s3 }
   0x3   :  { %2148 = sst [smem:[#allocation22_spill]] %s2133_s5 }
   0x4   :  { %2149 = sst [smem:[#allocation23_spill]] %s2134_s6 }
   0x5   :  { %2150 = sst [smem:[#allocation24_spill]] %s2135_s7 }
   0x6   :  { %12 = vsyncpa [#allocation4], 0 }
   0x7   :  { %14 = vsyncpa [#allocation4 + $0x1], 0 }
   0x8   :  { %15 = vsyncpa [#allocation7], 0 }
   0x9   :  { %16 = vsyncpa [#allocation5], 0 }
   0xa   :  { %18 = vsyncpa [#allocation5 + $0x1], 0  ;;  %s1803_s24 = smov 0   ;;  %s1805_s25 = smov 0  }
   0xb   :  { %s1807_s26 = smov 0   ;;  %s1809_s27 = smov 0  }
   0xc   :  { %s1811_s28 = smov 0   ;;  %s1813_s29 = smov 0  }
   0xd   :  { %s1815_s30 = smov 0   ;;  %s1817_s8 = smov 0  }
   0xe   :  { %s1819_s9 = smov 0   ;;  %s1821_s10 = smov 0  }
   0xf   :  { %s1823_s11 = smov 0  }
  0x10 LB: > { %2151 = sst [smem:[#allocation13_spill]] %s1706_s24  ;;  %s1278_s12 = sadd.s32 4294967295, %s1746_s11   ;;  %s1746_s11 = sphi %s1823_s11, %s24_s11   ;;  %s1742_s10 = sphi %s1821_s10, %s2187_s10   ;;  %s1738_s9 = sphi %s1819_s9, %s2178_s9   ;;  %s1734_s8 = sphi %s1817_s8, %s2186_s8   ;;  %s1730_s30 = sphi %s1815_s30, %s2177_s30   ;;  %s1726_s29 = sphi %s1813_s29, %s2185_s29   ;;  %s1722_s28 = sphi %s1811_s28, %s2184_s28   ;;  %s1718_s27 = sphi %s1809_s27, %s2183_s27   ;;  %s1714_s26 = sphi %s1807_s26, %s2182_s26   ;;  %s1710_s25 = sphi %s1805_s25, %s2181_s25   ;;  %s1706_s24 = sphi %s1803_s24, %s2180_s24  }
  0x11   : > { %2152 = sst [smem:[#allocation14_spill]] %s1734_s8  ;;  %s1279_s13 = sadd.s32 4294967294, %s1746_s11  }
  0x12   : > { %2153 = sst [smem:[#allocation15_spill]] %s1738_s9  ;;  %p56_p0 = scmp.ne.s32.totalorder %s1722_s28, %s1718_s27 }
  0x13   : > { %p1859_p1 = scmp.eq.s32.totalorder %s1278_s12, 0  ;;  %p207_p2 = scmp.ne.s32.totalorder %s1714_s26, %s1710_s25 }
  0x14   : > { %p208_p3 = scmp.eq.s32.totalorder %s1278_s12, 3  ;;  %p213_p5 = scmp.ne.s32.totalorder %s1710_s25, %s1706_s24 }
  0x15   : > { %p1867_p4 = por %p1859_p1, %p56_p0  ;;  %p214_p7 = scmp.eq.s32.totalorder %s1279_s13, 3 }
  0x16   : > { %p1873_p6 = por %p208_p3, %p207_p2  ;;  %p1280_p8 = scmp.ge.s32.totalorder %s1746_s11, 1 }
  0x17   : > { %p221_p9 = scmp.lt.s32.totalorder %s1746_s11, 5  ;;  %p1879_p10 = por %p214_p7, %p213_p5 }
  0x18   : > { %s2156_s16 = scalar_select %p1873_p6, 1, 0 }
  0x19   : > { %s2158_s17 = scalar_select %p1879_p10, 1, 0 }
  0x1a   : > { %2157 = sst [smem:[#allocation16_spill]] %s2156_s16  ;;  %p1883_p11 = pnand %p1280_p8, %p221_p9 }
  0x1b   : > { %2159 = sst [smem:[#allocation17_spill]] %s2158_s17  ;;  %s1748_s22 = smov [#allocation6]  }
  0x1c   : > { %s2161_s1 = sld [smem:[#allocation20_spill]]  ;;  %p1354_p12 = pneg %p1883_p11 }
  0x1d   : > { %s234_s23 = sshll.u32 %s1748_s22, 4  ;;  %s2162_s3 = sld [smem:[#allocation21_spill]]  ;;  %s235_s23 = int_to_ptr.vmem [resolvable:$true] %s234_s23 }
  0x1e   : > { %p1355_p13 = pnand %p1354_p12, %p1859_p1  ;;  %s2136_s19 = smov 64  }
  0x1f   : > { %s2137_s20 = smov 4   ;;  %s1751_s22 = smov [#allocation8]  }
  0x20   : > { %s33_s27 = sadd.s32 1, %s1738_s9  ;;  %s36_s12 = sadd.s32 1, %s1742_s10 }
  0x21   : > { %p34_p0 = scmp.ge.s32.totalorder %s33_s27, 2  ;;  %p50_p2 = scmp.ne.s32.totalorder %s1726_s29, %s1722_s28 }
  0x22   : > { %s232_s21 = sshll.u32 %s2161_s1, 4  ;;  %s251_s1 = sshll.u32 %s1751_s22, 4  ;;  %s233_s21 = int_to_ptr.hbm [resolvable:$true] %s232_s21  ;;  %s252_s1 = int_to_ptr.vmem [resolvable:$true] %s251_s1 }
  0x23   : > { %s249_s13 = sshll.u32 %s2162_s3, 4  ;;  %s2189_s27 = smov (%p34_p0, %s33_s27), 0  ;;  %s250_s13 = int_to_ptr.hbm [resolvable:$true] %s249_s13 }
  0x24   : > { %1357 = dma.hbm_to_vmem [thread:$0]  (!%p1355_p13), %s233_s21, 256, %s235_s23, [#allocation7], %s2136_s19, %s2136_s19, %s2137_s20  }
  0x25   : > { %1360 = dma.hbm_to_vmem [thread:$0]  (!%p1355_p13), %s250_s13, 256, %s252_s1, [#allocation7], %s2136_s19, %s2136_s19, %s2137_s20  }
  0x26   : > { %2163 = sst [smem:[#allocation18_spill]] %s2189_s27  ;;  %s2191_s12 = smov (!%p34_p0, %s36_s12), %s1742_s10 }
  0x27   : > { %s43_s21 = sadd.s32 1, %s1726_s29  ;;  %p51_p3 = scmp.eq.s32.totalorder %s1746_s11, 0 }
  0x28   : > { %p38_p5 = scmp.ge.s32.totalorder %s2191_s12, 2  ;;  %s193_s23 = ssub.s32 %s1738_s9, %s2189_s27 }
  0x29   : > { %p1914_p7 = por %p51_p3, %p50_p2  ;;  %s197_s1 = sadd.s32 1, %s1714_s26 }
  0x2a   : > { %s2193_s12 = smov (%p38_p5, %s2191_s12), 0  ;;  %p1371_p8 = scmp.lt.s32.totalorder %s1746_s11, 4 }
  0x2b   : > { %2165 = sst [smem:[#allocation19_spill]] %s2193_s12  ;;  %s274_s13 = sand.u32 1, %s1726_s29  }
  0x2c   : > { %s40_s19 = ssub.s32 %s1742_s10, %s2193_s12  ;;  %s1335_s20 = sshll.u32 %s1742_s10, 3 }
  0x2d   : > { %p41_p9 = scmp.eq.s32.totalorder %s40_s19, 0  ;;  %s194_s3 = sor.u32 %s193_s23, %s40_s19 }
  0x2e   : > { %p195_p12 = scmp.eq.s32.totalorder %s194_s3, 0  ;;  %s1284_s17 = sshll.u32 %s274_s13, 3 }
  0x2f   : > { %s1927_s24 = scalar_select %p41_p9, %s1726_s29, %s43_s21  }
  0x30   : > { %s1930_s27 = scalar_select %p195_p12, %s1714_s26, %s197_s1  }
  0x31   : > { %s283_s7 = scalar_lea.hbm %s2128_s0, %s1335_s20  ;;  %s278_s5 = scalar_lea.vmem [#allocation3], %s1284_s17 }
  0x32   : > { %s284_s6 = sshll.u32 %s283_s7, 4  ;;  %s286_s8 = sshll.u32 %s278_s5, 4  ;;  %s285_s6 = int_to_ptr.hbm [resolvable:$true] %s284_s6  ;;  %s287_s8 = int_to_ptr.vmem [resolvable:$true] %s286_s8 }
  0x33   : > { %p1362_p13 = pnand %p1371_p8, %p1914_p7  ;;  %s275_s12 = scalar_lea.sflag [#allocation4], %s274_s13 }
  0x34   : > { %s2166_s19 = smov 4   ;;  %s2167_s3 = smov 64  }
  0x35   : > { %1364 = dma.hbm_to_vmem [thread:$0]  (!%p1362_p13), %s285_s6, 128, %s287_s8, %s275_s12, %s2167_s3, %s2167_s3, %s2166_s19  }
  0x36   : > { %298 = sbr.rel (%p1883_p11) target bundleno = 2060 (0x80c), region = 48  ;;  %s300_s9 = sand.u32 (!%p1883_p11), 1, %s1722_s28  }
  0x37   : > { %s1945_s16 = sshll.u32 (!%p1883_p11), %s300_s9, 3  ;;  %s301_s5 = scalar_lea.sflag (!%p1883_p11), [#allocation4], %s300_s9 }
  0x38   : > { %s304_s7 = scalar_lea.vmem (!%p1883_p11), [#allocation3], %s1945_s16 }
  0x3b   : > { %1693 = dma.done.wait (%p1867_p4), %s301_s5, 128  }
  0x3c   : > { %1695 = vsyncadd (%p1867_p4), %s301_s5, 4294967168 }
  0x3d   : > { %1697 = dma.done.wait (%p1859_p1), [#allocation7], 512  }
  0x3e   : > { %1699 = vsyncadd (%p1859_p1), [#allocation7], 4294966784  ;;  %s343_s6 = sand.u32 1, %s1710_s25   ;;  %p1292_p11 = scmp.ne.s32.totalorder %s1730_s30, 0 }
  0x3f   : > { %s1959_s8 = sshll.u32 %s343_s6, 2 }
  0x40   : > { %s345_s17 = scalar_lea.vmem [#allocation9], %s1959_s8  ;;  %350 = sbr.rel (%p1292_p11) target bundleno = 216 (0xd8), region = 64 }
  0x45   : > { %v1338_v0 = vld [vmem:[#allocation6 + $0x8] sm:$0xff]  ;;  %v1337_v1 = vld [vmem:[#allocation6] sm:$0xff]  ;;  %v1336_v2 = vld [vmem:[%s304_s7] sm:$0xff]  ;;  %vm378_vm0 = vcmask 261120   ;;  %vm398_vm1 = vcmask 781312  }
  0x46   : > { %388 = vmatpush.bf16.msra.mxu0 %v1338_v0  ;;  %v1480_v3 = vld [vmem:[%s2130_s2] ss:$0 sm:$0xff] }
  0x4a   : > { %389 = vmatpush.bf16.msra.mxu0 %v1337_v1 }
  0x4d   : > { %1305 = vmatmul.msk.bf16.vlgmr.msra.gmra.mxu0 %vm378_vm0, %v1336_v2 }
  0xca   : > { %v391_v4 = vpop.f32.mrf.mxu0 }
  0xcb   : > { %v392_v5 = vadd.f32 %v1480_v3, %v391_v4 }
  0xcd   : > { %v396_v6 = vpack.c.bf16 %v392_v5, %v392_v5 }
  0xcf   : > { %399 = vst.msk [vmem:[#allocation2] sm:$0xf] %vm398_vm1, %v396_v6 }
  0xd2   : > { %v393_v7 = vpop.f32.mrf.mxu0 }
  0xd3   : > { %v394_v8 = vadd.f32 %v1480_v3, %v393_v7 }
  0xd5   : > { %v397_v9 = vpack.c.bf16 %v394_v8, %v394_v8 }
  0xd7   : > { %400 = vst.msk [vmem:[#allocation2 + $0x4] sm:$0xf] %vm398_vm1, %v397_v9 }
  0xd8 PF: > { %v414_v10 = vld [vmem:[#allocation2] sm:$0xf]  ;;  %s1752_s18 = smov 104   ;;  %s1753_s20 = smov 112   ;;  %vm522_vm2 = vcmask 1043456   ;;  %vm518_vm3 = vcmask 64512   ;;  %v600_v44 = vlaneseq }
  0xd9   : > { %426 = vrot.lane.b32.xlu1 %v414_v10, %s1752_s18  ;;  %422 = vrot.lane.b32.xlu0 %v414_v10, %s1753_s20  ;;  %s1754_s12 = smov 120   ;;  %s1306_s21 = sshll.u32 %s1730_s30, 3  ;;  %vm613_vm5 = vcmask 130048   ;;  %vm943_vm6 = vcmask 1047556   ;;  %vm1067_vm7 = vcmask 195584   ;;  %vm1090_vm8 = vcmask 261120  }
  0xda   : > { %418 = vrot.lane.b32.xlu2 %v414_v10, %s1754_s12  ;;  %s1975_s23 = sshra.s32 %s1306_s21, 3  ;;  %s1755_s1 = smov 96   ;;  %v601_v45 = vshrl.u32 %v600_v44, 7  ;;  %v602_v46 = vstv %s1306_s21  ;;  %v605_v48 = vand.u32 127, %v600_v44  ;;  %vm1152_vm13 = vcmask 257024  }
  0xdb   : > { %s1307_s22 = sshll.u32 %s1975_s23, 2  ;;  %s1756_s19 = smov 64  }
  0xdc   : > { %s405_s13 = scalar_lea.vmem [#allocation2], %s1307_s22  ;;  %v603_v47 = vadd.s32 %v602_v46, %v601_v45  ;;  %s1759_s3 = smov 24  }
  0xdd   : > { %s1760_s9 = smov 16   ;;  %s1761_s5 = smov 8  }
  0xde   : > { %v415_v11 = vld [vmem:[#allocation2 + $0x4] sm:$0xf]  ;;  %v406_v13 = vld [vmem:[%s405_s13] sm:$0xf]  ;;  %vm606_vm4 = vcmp.le.s32.totalorder %v605_v48, %v603_v47  ;;  %s1108_s14 = scalar_lea.vmem %s304_s7, %s1307_s22 [#allocation3]  ;;  %s2168_s16 = sld [smem:[#allocation14_spill]] }
  0xdf   : > { %v1977_v12 = vld [vmem:[#allocation2] sm:$0xff]  ;;  %s2169_s22 = sld [smem:[#allocation22_spill]] }
  0xe1   : > { %428 = vrot.lane.b32.xlu1 %v415_v11, %s1752_s18  ;;  %424 = vrot.lane.b32.xlu0 %v415_v11, %s1753_s20 }
  0xe2   : > { %420 = vrot.lane.b32.xlu2 %v415_v11, %s1754_s12 }
  0xe4   : > { %s1331_s7 = sshll.u32 %s2168_s16, 1 }
  0xea   : > { %442 = vrot.lane.b32.xlu2 %v1977_v12, %s1755_s1 }
  0xf2   : > { %412 = vrot.lane.b32.xlu2 %v406_v13, %s1752_s18  ;;  %s1169_s18 = sshll.u32 %s345_s17, 4  ;;  %s1170_s18 = int_to_ptr.vmem [resolvable:$true] %s1169_s18 }
 0x134   : > { %v419_v14 = vpop.permute.xlu2 %418 }
 0x135   : > { %v432_v26 = vunpack.c.l.b16 %v419_v14 }
 0x13c   : > { %v421_v23 = vpop.permute.xlu2 %420 }
 0x13d   : > { %v433_v27 = vunpack.c.l.b16 %v421_v23 }
 0x13f   : > { %v1989_v28 = vpack.c.b16 %v433_v27, %v432_v26 }
 0x144   : > { %v443_v31 = vpop.permute.xlu2 %442 }
 0x14b   : > { %v427_v15 = vpop.permute.xlu1 %426  ;;  %v423_v16 = vpop.permute.xlu0 %422 }
 0x14c   : > { %v436_v19 = vunpack.c.l.b16 %v427_v15  ;;  %v434_v20 = vunpack.c.l.b16 %v423_v16  ;;  %v413_v33 = vpop.permute.xlu2 %412 }
 0x153   : > { %v429_v17 = vpop.permute.xlu1 %428  ;;  %v425_v18 = vpop.permute.xlu0 %424 }
 0x154   : > { %v437_v21 = vunpack.c.l.b16 %v429_v17  ;;  %v435_v22 = vunpack.c.l.b16 %v425_v18 }
 0x156   : > { %v1983_v24 = vpack.c.b16 %v437_v21, %v436_v19  ;;  %v1985_v25 = vpack.c.b16 %v435_v22, %v434_v20 }
 0x158   : > { %448 = vrot.lane.b32.xlu1 %v1983_v24, %s1755_s1  ;;  %446 = vrot.lane.b32.xlu0 %v1985_v25, %s1755_s1 }
 0x160   : > { %444 = vrot.lane.b32.xlu0 %v1989_v28, %s1755_s1  ;;  %410 = vrot.lane.b32.xlu1 %v406_v13, %s1753_s20  ;;  %s1165_s20 = sadd.s32 %s1730_s30, %s1331_s7  ;;  %s1155_s7 = scalar_lea.sflag [#allocation5], %s343_s6 }
 0x168   : > { %408 = vrot.lane.b32.xlu1 %v406_v13, %s1754_s12  ;;  %s1332_s12 = sshll.u32 %s1165_s20, 2 }
 0x1ca   : > { %v449_v29 = vpop.permute.xlu1 %448  ;;  %v447_v30 = vpop.permute.xlu0 %446 }
 0x1cb   : > { %1481 = vxpose.binary.xlu0.c.b16.start.end [1/2] (short) (narrow) %v449_v29, %v447_v30, 16 }
 0x1d2   : > { %v445_v32 = vpop.permute.xlu0 %444  ;;  %v411_v36 = vpop.permute.xlu1 %410 }
 0x1d3   : > { %1484 = vxpose.binary.xlu2.c.b16.start.end [1/2] (short) (narrow) %v445_v32, %v443_v31, 16 }
 0x1da   : > { %v409_v41 = vpop.permute.xlu1 %408 }
 0x274   : > { %v1485_v34 = vpop.trf.xlu2 }
 0x275   : > { %v524_v35 = vsel %vm522_vm2, %v1485_v34, 0 }
 0x276   : > { %533 = vmatpush.bf16.msra.mxu0 %v524_v35 }
 0x277   : > { %v1482_v37 = vpop.trf.xlu0 }
 0x278   : > { %v562_v38 = vsel %vm522_vm2, %v1482_v37, 0 }
 0x279   : > { %1312 = vmatmul.msk.bf16.vlgmr.msra.gmra.mxu0 %vm518_vm3, %v406_v13  ;;  %571 = vmatpush.bf16.msra.mxu2 %v562_v38 }
 0x27c   : > { %1314 = vmatmul.msk.bf16.vlgmr.msra.gmra.mxu2 %vm518_vm3, %v411_v36  ;;  %v1486_v39 = vpop.trf.xlu2 }
 0x27d   : > { %v543_v40 = vsel %vm522_vm2, %v1486_v39, 0 }
 0x27e   : > { %552 = vmatpush.bf16.msra.mxu1 %v543_v40 }
 0x27f   : > { %v1483_v42 = vpop.trf.xlu0 }
 0x280   : > { %v581_v43 = vsel %vm522_vm2, %v1483_v42, 0 }
 0x281   : > { %590 = vmatpush.bf16.msra.mxu3 %v581_v43  ;;  %1313 = vmatmul.msk.bf16.vlgmr.msra.gmra.mxu1 %vm518_vm3, %v409_v41 }
 0x284   : > { %1315 = vmatmul.msk.bf16.vlgmr.msra.gmra.mxu3 %vm518_vm3, %v413_v33 }
 0x2f6   : > { %v535_v49 = vpop.f32.mrf.mxu0 }
 0x2f7   : > { %v596_v50 = vmul.f32 0.35355338, %v535_v49 }
 0x2f9   : > { %v609_v51 = vsel %vm606_vm4, %v596_v50, -1e+30 }
 0x2fa   : > { %v614_v52 = vsel %vm613_vm5, %v609_v51, -inf }
 0x2fb   : > { %615 = vmax.xlane.f32.xlu2 %v614_v52 }
 0x2fe   : > { %v554_v53 = vpop.f32.mrf.mxu1  ;;  %v537_v54 = vpop.f32.mrf.mxu0 }
 0x2ff   : > { %v573_v55 = vpop.f32.mrf.mxu2  ;;  %v597_v58 = vmul.f32 0.35355338, %v554_v53 }
 0x300   : > { %v598_v56 = vmul.f32 0.35355338, %v573_v55 }
 0x301   : > { %v610_v60 = vsel %vm606_vm4, %v597_v58, -1e+30 }
 0x302   : > { %v611_v57 = vsel %vm606_vm4, %v598_v56, -1e+30  ;;  %v617_v1 = vsel %vm613_vm5, %v610_v60, -inf }
 0x303   : > { %v620_v59 = vsel %vm613_vm5, %v611_v57, -inf }
 0x304   : > { %621 = vmax.xlane.f32.xlu1 %v620_v59 }
 0x306   : > { %v556_v61 = vpop.f32.mrf.mxu1 }
 0x307   : > { %v575_v62 = vpop.f32.mrf.mxu2  ;;  %v592_v63 = vpop.f32.mrf.mxu3 }
 0x308   : > { %v599_v0 = vmul.f32 0.35355338, %v592_v63  ;;  %v1757_v63 = vmov 1983009808  }
 0x30a   : > { %v612_v2 = vsel %vm606_vm4, %v599_v0, -1e+30  ;;  %v948_v0 = vunpack.c.l.s4 %v1757_v63 }
 0x30b   : > { %v623_v3 = vsel %vm613_vm5, %v612_v2, -inf }
 0x30c   : > { %624 = vmax.xlane.f32.xlu0 %v623_v3  ;;  %618 = vmax.xlane.f32.xlu1 %v617_v1 }
 0x30f   : > { %v594_v4 = vpop.f32.mrf.mxu3 }
 0x310   : > { %v949_v4 = vunpack.c.0.s8 %v948_v0 }
 0x325   : > { %666 = vrot.lane.b32.xlu1 %v1985_v25, %s1756_s19 }
 0x32d   : > { %668 = vrot.lane.b32.xlu1 %v1983_v24, %s1756_s19 }
 0x36e   : > { %v616_v5 = vpop.xlane.xlu2 %615 }
 0x36f   : > { %v626_v6 = vsub.f32 %v609_v51, %v616_v5 }
 0x371   : > { %v630_v7 = vmul.f32 1.442695, %v626_v6 }
 0x373   : > { %1510 = vpow2.f32 %v630_v7  ;;  %v1758_v7 = vmov 1934713408  }
 0x377   : > { %v622_v8 = vpop.xlane.xlu1 %621 }
 0x378   : > { %v628_v9 = vsub.f32 %v611_v57, %v622_v8  ;;  %v972_v8 = vunpack.c.l.s4 %v1758_v7 }
 0x379   : > { %v1511_v10 = vpop.eup %1510 }
 0x37a   : > { %v634_v11 = vmul.f32 1.442695, %v628_v9  ;;  %v638_v13 = vsel %vm613_vm5, %v1511_v10, 0.0 }
 0x37b   : > { %639 = vadd.xlane.f32.xlu2 %v638_v13 }
 0x37c   : > { %1512 = vpow2.f32 %v634_v11 }
 0x37f   : > { %v625_v14 = vpop.xlane.xlu0 %624  ;;  %v619_v21 = vpop.xlane.xlu1 %618 }
 0x380   : > { %v629_v15 = vsub.f32 %v612_v2, %v625_v14  ;;  %v627_v24 = vsub.f32 %v610_v60, %v619_v21 }
 0x382   : > { %v1513_v16 = vpop.eup %1512  ;;  %v636_v17 = vmul.f32 1.442695, %v629_v15  ;;  %v632_v25 = vmul.f32 1.442695, %v627_v24 }
 0x383   : > { %v644_v18 = vsel %vm613_vm5, %v1513_v16, 0.0 }
 0x384   : > { %1514 = vpow2.f32 %v636_v17  ;;  %645 = vadd.xlane.f32.xlu1 %v644_v18 }
 0x385   : > { %1516 = vpow2.f32 %v632_v25 }
 0x38a   : > { %v1515_v19 = vpop.eup %1514 }
 0x38b   : > { %v647_v20 = vsel %vm613_vm5, %v1515_v19, 0.0  ;;  %v1517_v26 = vpop.eup %1516 }
 0x38c   : > { %648 = vadd.xlane.f32.xlu0 %v647_v20  ;;  %v641_v27 = vsel %vm613_vm5, %v1517_v26, 0.0 }
 0x397   : > { %v667_v22 = vpop.permute.xlu1 %666 }
 0x39d   : > { %662 = vrot.lane.b32.xlu1 %v1977_v12, %s1756_s19 }
 0x39f   : > { %v669_v23 = vpop.permute.xlu1 %668 }
 0x3a0   : > { %664 = vrot.lane.b32.xlu0 %v1989_v28, %s1756_s19  ;;  %s2170_s19 = sld [smem:[#allocation23_spill]] }
 0x3a4   : > { %1487 = vxpose.binary.xlu2.c.b16.start.end [1/2] (short) (narrow) %v669_v23, %v667_v22, 16 }
 0x3c7   : > { %642 = vadd.xlane.f32.xlu1 %v641_v27 }
 0x3ee   : > { %v640_v29 = vpop.xlane.xlu2 %639 }
 0x3ef   : > { %1518 = vrcp.f32 %v640_v29 }
 0x3f5   : > { %v1519_v30 = vpop.eup %1518 }
 0x3f6   : > { %v654_v31 = vmul.f32 %v1519_v30, %v1511_v10 }
 0x3f7   : > { %v646_v32 = vpop.xlane.xlu1 %645 }
 0x3f8   : > { %1520 = vrcp.f32 %v646_v32  ;;  %v658_v33 = vpack.c.bf16 %v654_v31, %v654_v31 }
 0x3fa   : > { %v742_v12 = vsel %vm613_vm5, %v658_v33, 0 }
 0x3fb   : > { %751 = vmatpush.bf16.xpose.msrb.mxu0 %v742_v12 }
 0x3fe   : > { %v1521_v28 = vpop.eup %1520 }
 0x3ff   : > { %v649_v34 = vpop.xlane.xlu0 %648  ;;  %v656_v35 = vmul.f32 %v1521_v28, %v1513_v16 }
 0x400   : > { %1522 = vrcp.f32 %v649_v34 }
 0x401   : > { %v660_v36 = vpack.c.bf16 %v656_v35, %v656_v35 }
 0x403   : > { %v780_v37 = vsel %vm613_vm5, %v660_v36, 0 }
 0x404   : > { %789 = vmatpush.bf16.xpose.msrb.mxu2 %v780_v37 }
 0x406   : > { %v1523_v38 = vpop.eup %1522 }
 0x407   : > { %v657_v39 = vmul.f32 %v1523_v38, %v1515_v19  ;;  %v973_v19 = vunpack.c.0.s8 %v972_v8 }
 0x409   : > { %v661_v40 = vpack.c.bf16 %v657_v39, %v657_v39 }
 0x40b   : > { %v799_v41 = vsel %vm613_vm5, %v661_v40, 0 }
 0x40c   : > { %808 = vmatpush.bf16.xpose.msrb.mxu3 %v799_v41 }
 0x40f   : > { %v663_v42 = vpop.permute.xlu1 %662 }
 0x412   : > { %v665_v43 = vpop.permute.xlu0 %664 }
 0x413   : > { %1490 = vxpose.binary.xlu0.c.b16.start.end [1/2] (short) (narrow) %v665_v43, %v663_v42, 16 }
 0x43a   : > { %v643_v44 = vpop.xlane.xlu1 %642 }
 0x43b   : > { %1524 = vrcp.f32 %v643_v44 }
 0x441   : > { %v1525_v45 = vpop.eup %1524 }
 0x442   : > { %v655_v46 = vmul.f32 %v1525_v45, %v1517_v26 }
 0x444   : > { %v659_v47 = vpack.c.bf16 %v655_v46, %v655_v46 }
 0x445   : > { %v1488_v48 = vpop.trf.xlu2 }
 0x446   : > { %v761_v49 = vsel %vm613_vm5, %v659_v47, 0  ;;  %1318 = vmatmul.msk.bf16.vlgmr.msrb.gmra.mxu2 %vm613_vm5, %v1488_v48 }
 0x447   : > { %770 = vmatpush.bf16.xpose.msrb.mxu1 %v761_v49 }
 0x44d   : > { %v1489_v50 = vpop.trf.xlu2 }
 0x44e   : > { %1319 = vmatmul.msk.bf16.vlgmr.msrb.gmra.mxu3 %vm613_vm5, %v1489_v50 }
 0x4bf   : > { %v1491_v51 = vpop.trf.xlu0 }
 0x4c0   : > { %1316 = vmatmul.msk.bf16.vlgmr.msrb.gmra.mxu0 %vm613_vm5, %v1491_v51 }
 0x4c7   : > { %v1492_v52 = vpop.trf.xlu0 }
 0x4c8   : > { %1317 = vmatmul.msk.bf16.vlgmr.msrb.gmra.mxu1 %vm613_vm5, %v1492_v52 }
 0x4c9   : > { %v791_v53 = vpop.f32.mrf.mxu2 }
 0x4d1   : > { %v793_v54 = vpop.f32.mrf.mxu2  ;;  %v810_v55 = vpop.f32.mrf.mxu3 }
 0x4d9   : > { %v812_v56 = vpop.f32.mrf.mxu3 }
 0x53d   : > { %v753_v57 = vpop.f32.mrf.mxu0 }
 0x53e   : > { %v1493_v58 = vpack.i.bf16 %v753_v57, %v791_v53 }
 0x540   : > { %1494 = vxpose.xlu1.b32.start.end [1/1] (short) (narrow) %v1493_v58, 8 }
 0x545   : > { %v755_v59 = vpop.f32.mrf.mxu0  ;;  %v772_v60 = vpop.f32.mrf.mxu1 }
 0x546   : > { %v1500_v61 = vpack.i.bf16 %v772_v60, %v810_v55 }
 0x548   : > { %1501 = vxpose.xlu2.b32.start.end [1/1] (short) (narrow) %v1500_v61, 8 }
 0x54d   : > { %v774_v62 = vpop.f32.mrf.mxu1 }
 0x5e1   : > { %v1502_v1 = vpop.trf.xlu2 }
 0x5e2   : > { %v1506_v2 = vunpack.i.h.bf16 %v1502_v1  ;;  %v1503_v3 = vunpack.i.l.bf16 %v1502_v1 }
 0x5e4   : > { %v957_v5 = vrot.slane %v1506_v2, 4  ;;  %v955_v6 = vrot.slane %v1503_v3, 4  ;;  %v1495_v9 = vpop.trf.xlu1 }
 0x5e5   : > { %v1499_v10 = vunpack.i.h.bf16 %v1495_v9  ;;  %v1496_v11 = vunpack.i.l.bf16 %v1495_v9  ;;  %v1341_v9 = vld [vmem:[#allocation8 + $0x8] sm:$0xff] }
 0x5e6   : > { %v956_v13 = vsel %vm943_vm6, %v955_v6, %v1506_v2  ;;  %v958_v14 = vsel %vm943_vm6, %v1503_v3, %v957_v5  ;;  %1100 = vmatpush.bf16.msra.mxu0 %v1341_v9 }
 0x5e7   : > { %v962_v15 = vperm.slane %v956_v13, %v949_v4  ;;  %v966_v16 = vperm.slane %v958_v14, %v949_v4  ;;  %v945_v17 = vrot.slane %v1499_v10, 4  ;;  %v942_v18 = vrot.slane %v1496_v11, 4 }
 0x5e9   : > { %v967_v20 = vrot.slane %v962_v15, 4  ;;  %v979_v21 = vrot.slane %v966_v16, 4  ;;  %v944_v22 = vsel %vm943_vm6, %v942_v18, %v1499_v10  ;;  %v946_v23 = vsel %vm943_vm6, %v1496_v11, %v945_v17  ;;  %v1340_v10 = vld [vmem:[#allocation8] sm:$0xff] }
 0x5ea   : > { %v950_v24 = vperm.slane %v944_v22, %v949_v4  ;;  %v954_v25 = vperm.slane %v946_v23, %v949_v4  ;;  %1101 = vmatpush.bf16.msra.mxu0 %v1340_v10 }
 0x5ec   : > { %v968_v26 = vsel %vm943_vm6, %v967_v20, %v950_v24  ;;  %v969_v27 = vrot.slane %v950_v24, 4  ;;  %v980_v29 = vsel %vm943_vm6, %v979_v21, %v954_v25  ;;  %v981_v30 = vrot.slane %v954_v25, 4  ;;  %v1507_v20 = vld [vmem:[%s2132_s4] ss:$0 sm:$0xff] }
 0x5ed   : > { %v974_v31 = vperm.slane %v968_v26, %v973_v19  ;;  %v986_v32 = vperm.slane %v980_v29, %v973_v19 }
 0x5ee   : > { %v970_v33 = vsel %vm943_vm6, %v962_v15, %v969_v27  ;;  %v982_v12 = vsel %vm943_vm6, %v966_v16, %v981_v30  ;;  %v1762_v27 = vmov 32.0  }
 0x5ef   : > { %v978_v28 = vperm.slane %v970_v33, %v973_v19  ;;  %v990_v34 = vperm.slane %v982_v12, %v973_v19  ;;  %v991_v35 = vrot.slane %v974_v31, 4  ;;  %v995_v37 = vrot.slane %v986_v32, 4 }
 0x5f0   : > { %1526 = vrcp.f32 %v1762_v27 }
 0x5f1   : > { %v993_v36 = vrot.slane %v978_v28, 4  ;;  %v997_v38 = vrot.slane %v990_v34, 4  ;;  %v992_v47 = vsel %vm943_vm6, 0.0, %v991_v35  ;;  %v996_v48 = vsel %vm943_vm6, 0.0, %v995_v37 }
 0x5f3   : > { %v994_v39 = vsel %vm943_vm6, 0.0, %v993_v36  ;;  %v998_v40 = vsel %vm943_vm6, 0.0, %v997_v38  ;;  %v999_v41 = vsel %vm943_vm6, %v993_v36, %v974_v31  ;;  %v1010_v42 = vsel %vm943_vm6, %v997_v38, %v986_v32 }
 0x5f4   : > { %v1003_v43 = vperm.slane %v999_v41, %v949_v4  ;;  %v1004_v44 = vrot.slane %v994_v39, 4  ;;  %v1014_v45 = vperm.slane %v1010_v42, %v949_v4  ;;  %v1015_v46 = vrot.slane %v998_v40, 4 }
 0x5f6   : > { %v1005_v49 = vsel %vm943_vm6, %v1004_v44, %v992_v47  ;;  %v1016_v50 = vsel %vm943_vm6, %v1015_v46, %v996_v48  ;;  %v1023_v51 = vrot.slane %v1003_v43, 4  ;;  %v1035_v52 = vrot.slane %v1014_v45, 4  ;;  %v1527_v29 = vpop.eup %1526  ;;  %v1508_v47 = vld [vmem:[%s2169_s22] ss:$0 sm:$0xff] }
 0x5f7   : > { %v1009_v53 = vperm.slane %v1005_v49, %v949_v4  ;;  %v1020_v54 = vperm.slane %v1016_v50, %v949_v4  ;;  %v1118_v30 = vmul.f32 32.0, %v1527_v29  ;;  %vm1122_vm9 = vweird.f32 %v1527_v29  ;;  %v1509_v50 = vld [vmem:[%s2170_s19] ss:$0 sm:$0xff] }
 0x5f9   : > { %v1024_v55 = vsel %vm943_vm6, %v1009_v53, %v1023_v51  ;;  %v1036_v56 = vsel %vm943_vm6, %v1020_v54, %v1035_v52  ;;  %v1021_v57 = vrot.slane %v1009_v53, 4  ;;  %v1033_v58 = vrot.slane %v1020_v54, 4 }
 0x5fa   : > { %v1032_v59 = vperm.slane %v1024_v55, %v973_v19  ;;  %v1044_v60 = vperm.slane %v1036_v56, %v973_v19  ;;  %v1119_v31 = vsub.f32 1.0, %v1118_v30 }
 0x5fb   : > { %v1022_v61 = vsel %vm943_vm6, %v1021_v57, %v1003_v43  ;;  %v1034_v62 = vsel %vm943_vm6, %v1033_v58, %v1014_v45 }
 0x5fc   : > { %v1051_v63 = vrot.slane %v1032_v59, 4  ;;  %v1049_v0 = vrot.slane %v1044_v60, 4  ;;  %v1028_v1 = vperm.slane %v1022_v61, %v973_v19  ;;  %v1040_v2 = vperm.slane %v1034_v62, %v973_v19  ;;  %v1109_v19 = vld [vmem:[%s1108_s14] sm:$0xf] }
 0x5fd   : > { %v1110_v21 = vunpack.c.l.bf16 %v1109_v19  ;;  %v1120_v32 = vmul.f32 %v1527_v29, %v1119_v31 }
 0x5fe   : > { %v1052_v3 = vsel %vm943_vm6, %v1044_v60, %v1051_v63  ;;  %v1050_v4 = vsel %vm943_vm6, %v1049_v0, %v1032_v59  ;;  %v1045_v5 = vrot.slane %v1040_v2, 4  ;;  %v1047_v6 = vrot.slane %v1028_v1, 4 }
 0x5ff   : > { %1062 = vrot.lane.b32.xlu1 %v1052_v3, %s1759_s3  ;;  %1058 = vrot.lane.b32.xlu2 %v1050_v4, %s1760_s9  ;;  %v1121_v33 = vadd.f32 %v1527_v29, %v1120_v32  ;;  %s2171_s9 = sld [smem:[#allocation24_spill]] }
 0x600   : > { %v1048_v7 = vsel %vm943_vm6, %v1040_v2, %v1047_v6  ;;  %v1046_v8 = vsel %vm943_vm6, %v1045_v5, %v1028_v1 }
 0x601   : > { %1054 = vrot.lane.b32.xlu0 %v1048_v7, %s1761_s5  ;;  %v1123_v12 = vsel %vm1122_vm9, %v1527_v29, %v1121_v33 }
 0x605   : > { %s2172_s5 = smov %s2171_s9  ;;  %s1167_s15 = scalar_lea.hbm %s2171_s9, %s1332_s12 }
 0x606   : > { %s1171_s16 = sshll.u32 %s1167_s15, 4  ;;  %s1640_s22 = scalar_lea.hbm %s2172_s5, 16  ;;  %s1172_s16 = int_to_ptr.hbm [resolvable:$true] %s1171_s16 }
 0x607   : > { %s1634_s20 = sshra.s32 %s1172_s16, 4  ;;  %s1635_s20 = int_to_ptr.hbm [resolvable:$true] %s1634_s20 }
 0x608   : > { %s1636_s21 = scalar_lea.hbm %s1635_s20, 4  ;;  %p1641_p2 = scmp.lt.s32.totalorder %s1635_s20, %s2172_s5 }
 0x609   : > { %p1637_p1 = scmp.ne.s32.totalorder %s1635_s20, %s1636_s21  ;;  %p1642_p3 = scmp.lt.s32.totalorder %s1640_s22, %s1636_s21 }
 0x60b   : > { %p1638_p4 = pnand %p1637_p1, %p1873_p6  ;;  %p1643_p5 = por %p1642_p3, %p1641_p2 }
 0x60d   : > { %p1639_p0 = pneg %p1638_p4 }
 0x60f   : > { %p1644_p7 = pnand %p1643_p5, %p1639_p0 }
 0x659   : > { %v1059_v13 = vpop.permute.xlu2 %1058 }
 0x671   : > { %v1063_v15 = vpop.permute.xlu1 %1062 }
 0x673   : > { %v1055_v11 = vpop.permute.xlu0 %1054 }
 0x674   : > { %v1065_v14 = vsel %vm518_vm3, %v1046_v8, %v1055_v11 }
 0x675   : > { %v1066_v16 = vsel %vm613_vm5, %v1065_v14, %v1059_v13 }
 0x676   : > { %v1068_v17 = vsel %vm1067_vm7, %v1066_v16, %v1063_v15 }
 0x677   : > { %v1069_v18 = vpack.c.bf16 %v1068_v17, %v1068_v17 }
 0x679   : > { %1328 = vmatmul.msk.bf16.vlgmr.msra.gmra.mxu0 %vm1090_vm8, %v1069_v18 }
 0x6f6   : > { %v1103_v22 = vpop.f32.mrf.mxu0 }
 0x6f7   : > { %v1104_v23 = vadd.f32 %v1507_v20, %v1103_v22 }
 0x6f9   : > { %v1111_v24 = vadd.f32 %v1110_v21, %v1104_v23 }
 0x6fb   : > { %v1114_v25 = vsel %vm1090_vm8, %v1111_v24, 0.0 }
 0x6fc   : > { %1115 = vadd.xlane.f32.xlu0 %v1114_v25 }
 0x6fe   : > { %v1105_v26 = vpop.f32.mrf.mxu0 }
 0x76f   : > { %v1116_v28 = vpop.xlane.xlu0 %1115 }
 0x770   : > { %v1124_v34 = vmul.f32 %v1123_v12, %v1116_v28 }
 0x772   : > { %v1125_v35 = vsub.f32 %v1111_v24, %v1124_v34 }
 0x774   : > { %v1126_v36 = vmul.f32 %v1125_v35, %v1125_v35 }
 0x776   : > { %v1127_v37 = vsel %vm1090_vm8, %v1126_v36, 0.0 }
 0x777   : > { %1128 = vadd.xlane.f32.xlu2 %v1127_v37 }
 0x7ea   : > { %v1129_v38 = vpop.xlane.xlu2 %1128 }
 0x7eb   : > { %v1130_v39 = vmul.f32 %v1129_v38, %v1123_v12 }
 0x7ed   : > { %v1131_v40 = vadd.f32 1e-05, %v1130_v39 }
 0x7ef   : > { %1528 = vrsqrt.f32 %v1131_v40  ;;  %vm1138_vm11 = vweird.f32 %v1131_v40 }
 0x7f5   : > { %v1529_v41 = vpop.eup %1528 }
 0x7f6   : > { %v1133_v42 = vmul.f32 %v1529_v41, %v1131_v40  ;;  %vm1139_vm10 = vweird.f32 %v1529_v41 }
 0x7f7   : > { %vm1140_vm12 = vmor %vm1138_vm11, %vm1139_vm10 }
 0x7f8   : > { %v1134_v43 = vmul.f32 %v1529_v41, %v1133_v42 }
 0x7fa   : > { %v1135_v44 = vmul.f32 0.5, %v1134_v43 }
 0x7fc   : > { %v1136_v45 = vsub.f32 1.5, %v1135_v44 }
 0x7fe   : > { %v1137_v46 = vmul.f32 %v1529_v41, %v1136_v45 }
 0x800   : > { %v1141_v48 = vsel %vm1140_vm12, %v1529_v41, %v1137_v46 }
 0x801   : > { %v1142_v49 = vmul.f32 %v1141_v48, %v1125_v35 }
 0x803   : > { %v1146_v51 = vmul.f32 %v1508_v47, %v1142_v49 }
 0x805   : > { %v1150_v52 = vadd.f32 %v1509_v50, %v1146_v51 }
 0x807   : > { %v1151_v53 = vpack.c.bf16 %v1150_v52, %v1150_v52 }
 0x809   : > { %1153 = vst.msk [vmem:[%s345_s17] sm:$0xf] %vm1152_vm13, %v1151_v53 }
 0x80a   : > { %1647 = shalt.err (!%p1644_p7)
}
 0x80b   : > { %1352 = dma.vmem_to_hbm [thread:$0]  (%p1873_p6), %s1170_s18, 64, %s1172_s16, %s1155_s7  }
 0x80c PF: > { %s2174_s6 = sld [smem:[#allocation13_spill]]  ;;  %p1374_p8 = scmp.ge.s32.totalorder %s1746_s11, 2 }
 0x80e   : > { %p1366_p9 = pnand %p1374_p8, %p1879_p10 }
 0x810   : > { %p1367_p12 = pneg %p1366_p9 }
 0x812   : > { %s1183_s17 = sand.u32 1, %s2174_s6  }
 0x813   : > { %s1184_s19 = scalar_lea.sflag [#allocation5], %s1183_s17 }
 0x814   : > { %1701 = dma.done.wait (%p1367_p12), %s1184_s19, 64  }
 0x815   : > { %1703 = vsyncadd (%p1367_p12), %s1184_s19, 4294967232  ;;  %s24_s11 = sadd.s32 1, %s1746_s11   ;;  %s2176_s3 = smov %s1927_s24 }
 0x816   : > { %p21_p13 = scmp.ge.s32.totalorder %s24_s11, 6   ;;  %s2177_s30 = sld [smem:[#allocation15_spill]] }
 0x817   : > { %s2178_s9 = sld [smem:[#allocation18_spill]]  ;;  %s2180_s24 = smov %s1710_s25 }
 0x818   : > { %s2179_s14 = sld [smem:[#allocation19_spill]]  ;;  %s2181_s25 = smov %s1714_s26 }
 0x819   : > { %s2182_s26 = smov %s1930_s27  ;;  %s2183_s27 = smov %s1722_s28 }
 0x81a   : > { %s2184_s28 = smov %s1726_s29  ;;  %s2185_s29 = smov %s2176_s3 }
 0x81b   : > { %s2186_s8 = smov %s1742_s10  ;;  %23 = sbr.rel (!%p21_p13) target bundleno = 16 (0x10), region = 107 }
 0x81e   : > { %s2187_s10 = smov %s2179_s14 }
 0x820   :  { %1190 = vsyncpa [#allocation4], 1 }
 0x821   :  { %1192 = vsyncpa [#allocation4 + $0x1], 1 }
 0x822   :  { %1193 = vsyncpa [#allocation7], 1 }
 0x823   :  { %1194 = vsyncpa [#allocation5], 1 }
 0x824   :  { %1196 = vsyncpa [#allocation5 + $0x1], 1 }

</bundles_post_ra>
